<compile_context>
chip_gen: v5e
topology: v5e:2x2
jax: 0.10.0
libtpu: 0.0.40
codegen_flags: <defaults>
</compile_context>

<pallas_src>
import functools

import jax
import jax.numpy as jnp
from jax.experimental import pallas as pl
from jax.experimental.pallas import tpu as pltpu


# ---------------------------------------------------------------------------
# Kernels
# ---------------------------------------------------------------------------
def conv_relu_kernel(p_ref, w_ref, b_ref, o_ref):
    # p_ref: (TM, Kp) bf16 im2col rows; w_ref: (Kp, Cp) bf16; b_ref: (1, Cp) f32
    acc = jnp.dot(p_ref[...], w_ref[...], preferred_element_type=jnp.float32)
    acc = jnp.maximum(acc + b_ref[...], 0.0)
    o_ref[...] = acc.astype(o_ref.dtype)


def conv_relu_pool_kernel(p_ref, w_ref, b_ref, o_ref, *, s_valid, ts, inv_hw):
    # p_ref: (TS, Kp) bf16 im2col rows of ONE batch image (spatial tile j)
    # o_ref: (1, Cp) f32 pooled accumulator, resident across the spatial axis
    j = pl.program_id(1)

    acc = jnp.dot(p_ref[...], w_ref[...], preferred_element_type=jnp.float32)
    acc = jnp.maximum(acc + b_ref[...], 0.0)                      # (TS, Cp)

    # Mask padded spatial rows so they don't pollute the pooled sum.
    row = jax.lax.broadcasted_iota(jnp.int32, acc.shape, 0) + j * ts
    acc = jnp.where(row < s_valid, acc, 0.0)
    partial = jnp.sum(acc, axis=0, keepdims=True)                 # (1, Cp)

    @pl.when(j == 0)
    def _():
        o_ref[...] = jnp.zeros_like(o_ref)

    o_ref[...] += partial

    @pl.when(j == pl.num_programs(1) - 1)
    def _():
        o_ref[...] = o_ref[...] * inv_hw                          # mean over H*W


# ---------------------------------------------------------------------------
# Glue (padding / im2col / wrappers)
# ---------------------------------------------------------------------------
def _round_up(x, m):
    return ((x + m - 1) // m) * m


def im2col(x_nhwc, ksize, stride, pad):
    """Extract ksize x ksize patches -> (N, Ho, Wo, ksize*ksize*C)."""
    N, H, W, C = x_nhwc.shape
    xp = jnp.pad(x_nhwc, ((0, 0), (pad, pad), (pad, pad), (0, 0)))
    Ho = (H + 2 * pad - ksize) // stride + 1
    Wo = (W + 2 * pad - ksize) // stride + 1
    cols = []
    for i in range(ksize):
        for j in range(ksize):
            cols.append(xp[:, i:i + stride * Ho:stride, j:j + stride * Wo:stride, :])
    patches = jnp.concatenate(cols, axis=-1)          # (N, Ho, Wo, k*k*C)
    return patches, Ho, Wo


def conv_relu_pallas(x_nhwc, w_km, b, *, stride, pad, ksize, tm=512):
    """Backbone conv layer: im2col + M-tiled Pallas matmul/bias/ReLU (bf16 in, bf16 out)."""
    N = x_nhwc.shape[0]
    patches, Ho, Wo = im2col(x_nhwc, ksize, stride, pad)
    K = patches.shape[-1]
    M = N * Ho * Wo
    Cout = w_km.shape[1]

    K_pad = _round_up(K, 8)
    C_pad = _round_up(Cout, 128)              # lane-dense output (no masked vst)
    TM = min(tm, _round_up(M, 8))             # tile rows; multiple of 8 sublanes
    M_pad = _round_up(M, TM)

    p = jnp.zeros((M_pad, K_pad), jnp.bfloat16)
    p = p.at[:M, :K].set(patches.reshape(M, K).astype(jnp.bfloat16))
    w = jnp.zeros((K_pad, C_pad), jnp.bfloat16).at[:K, :Cout].set(
        w_km.astype(jnp.bfloat16))
    bb = jnp.zeros((1, C_pad), jnp.float32).at[0, :Cout].set(b.astype(jnp.float32))

    out = pl.pallas_call(
        conv_relu_kernel,
        out_shape=jax.ShapeDtypeStruct((M_pad, C_pad), jnp.bfloat16),
        grid=(M_pad // TM,),
        in_specs=[
            pl.BlockSpec((TM, K_pad), lambda i: (i, 0)),       # patch rows: tiled
            pl.BlockSpec((K_pad, C_pad), lambda i: (0, 0)),    # weights: resident
            pl.BlockSpec((1, C_pad), lambda i: (0, 0)),        # bias: resident
        ],
        out_specs=pl.BlockSpec((TM, C_pad), lambda i: (i, 0)),
        compiler_params=pltpu.CompilerParams(
            dimension_semantics=("parallel",),
            vmem_limit_bytes=32 * 1024 * 1024,
        ),
    )(p, w, bb)

    return out[:M, :Cout].reshape(N, Ho, Wo, Cout)


def conv_relu_pool_pallas(x_nhwc, w_km, b, *, stride, pad, ksize, ts=512):
    """Last backbone conv with the global (1,1) average pool fused in the epilogue.

    Returns the pooled + flattened feature (N, Cout) in f32; the layer-2
    activation is never written to HBM.
    """
    N = x_nhwc.shape[0]
    patches, Ho, Wo = im2col(x_nhwc, ksize, stride, pad)   # (N, Ho, Wo, K)
    S = Ho * Wo
    K = patches.shape[-1]
    Cout = w_km.shape[1]

    K_pad = _round_up(K, 8)
    C_pad = _round_up(Cout, 128)
    TS = min(ts, _round_up(S, 8))
    S_pad = _round_up(S, TS)

    p = jnp.zeros((N, S_pad, K_pad), jnp.bfloat16)
    p = p.at[:, :S, :K].set(patches.reshape(N, S, K).astype(jnp.bfloat16))
    w = jnp.zeros((K_pad, C_pad), jnp.bfloat16).at[:K, :Cout].set(
        w_km.astype(jnp.bfloat16))
    bb = jnp.zeros((1, C_pad), jnp.float32).at[0, :Cout].set(b.astype(jnp.float32))

    kernel = functools.partial(
        conv_relu_pool_kernel, s_valid=S, ts=TS, inv_hw=1.0 / float(S))

    out = pl.pallas_call(
        kernel,
        out_shape=jax.ShapeDtypeStruct((N, 1, C_pad), jnp.float32),
        grid=(N, S_pad // TS),                           # batch parallel, spatial reduce
        in_specs=[
            pl.BlockSpec((None, TS, K_pad), lambda n, j: (n, j, 0)),
            pl.BlockSpec((K_pad, C_pad), lambda n, j: (0, 0)),
            pl.BlockSpec((1, C_pad), lambda n, j: (0, 0)),
        ],
        out_specs=pl.BlockSpec((None, 1, C_pad), lambda n, j: (n, 0, 0)),
        compiler_params=pltpu.CompilerParams(
            dimension_semantics=("parallel", "arbitrary"),
            vmem_limit_bytes=32 * 1024 * 1024,
        ),
    )(p, w, bb)

    return out[:, 0, :Cout]                               # (N, Cout) == view(N, -1)


def _extract_impl(params, img_nchw, *, ksize):
    # NCHW (PyTorch convention) -> NHWC (TPU lane dim = channels)
    x = jnp.transpose(img_nchw, (0, 2, 3, 1)).astype(jnp.float32)
    f1 = conv_relu_pallas(x, params["w1"], params["b1"],
                          stride=2, pad=1, ksize=ksize)
    # Last backbone stage + AdaptiveAvgPool2d((1,1)) + flatten, fused.
    pooled = conv_relu_pool_pallas(f1, params["w2"], params["b2"],
                                   stride=2, pad=1, ksize=ksize)
    return pooled


# ---------------------------------------------------------------------------
# Extractor
# ---------------------------------------------------------------------------
class Extractor:
    """Synthetic 2-conv backbone + fused avgpool extractor (Pallas hot path)."""

    def __init__(self, key, in_ch=3, ch1=16, ch2=32, ksize=3):
        k1, k2, k3, k4 = jax.random.split(key, 4)
        # Weights stored directly in (kh*kw*Cin, Cout) matmul layout
        # (== PyTorch (Cout, Cin, kh, kw) permuted to (kh, kw, Cin, Cout)).
        fan1 = ksize * ksize * in_ch
        fan2 = ksize * ksize * ch1
        self.w1 = jax.random.normal(k1, (fan1, ch1), jnp.float32) / jnp.sqrt(fan1)
        self.b1 = 0.01 * jax.random.normal(k2, (ch1,), jnp.float32)
        self.w2 = jax.random.normal(k3, (fan2, ch2), jnp.float32) / jnp.sqrt(fan2)
        self.b2 = 0.01 * jax.random.normal(k4, (ch2,), jnp.float32)
        self.ksize = ksize
        # Single traced program: transposes, padding, im2col and both pallas_calls.
        self._extract_jit = jax.jit(functools.partial(_extract_impl, ksize=ksize))

    def forward(self, img, mode="extract"):
        if mode == "extract":
            return self.forward_extract(img)
        raise Exception("No such mode: {}".format(mode))

    def forward_extract(self, img):
        params = dict(w1=self.w1, b1=self.b1, w2=self.w2, b2=self.b2)
        pooled = self._extract_jit(params, img)          # (N, C_last) f32
        # `.cpu()` in the reference -> host transfer of the final result only.
        return dict(backbone=jax.device_get(pooled))


# ---------------------------------------------------------------------------
if __name__ == "__main__":
    key = jax.random.PRNGKey(0)
    k_param, k_img = jax.random.split(key)

    model = Extractor(k_param, in_ch=3, ch1=16, ch2=32)

    # Small NCHW image batch, consistent with PyTorch conv input convention.
    img = jax.random.normal(k_img, (2, 3, 16, 16), jnp.float32)

    out = model.forward(img, mode="extract")
    feats = jax.block_until_ready(jnp.asarray(out["backbone"]))

    assert feats.shape == (2, 32), feats.shape
    assert feats.dtype == jnp.float32
    assert bool(jnp.all(jnp.isfinite(feats)))
    print("KERNEL_OK")
</pallas_src>

<mosaic_0001>
module attributes {stable_mosaic.version = 11 : i64} {
  func.func @conv_relu_kernel(%arg0: i32, %arg1: memref<128x32xbf16, #tpu.memory_space<vmem>>, %arg2: memref<32x128xbf16, #tpu.memory_space<vmem>>, %arg3: memref<1x128xf32, #tpu.memory_space<vmem>>, %arg4: memref<128x128xbf16, #tpu.memory_space<vmem>>) attributes {dimension_semantics = [#tpu.dimension_semantics<parallel>], iteration_bounds = array<i64: 1>, scalar_prefetch = 0 : i64, scratch_operands = 0 : i64, tpu.core_type = #tpu.core_type<tc>, window_params = [{transform_indices = @transform_0, window_bounds = array<i64: 128, 32>}, {pipeline_mode = #tpu.pipeline_mode<synchronous>, transform_indices = @transform_1, window_bounds = array<i64: 32, 128>}, {pipeline_mode = #tpu.pipeline_mode<synchronous>, transform_indices = @transform_2, window_bounds = array<i64: 1, 128>}, {transform_indices = @transform_3, window_bounds = array<i64: 128, 128>}]} {
    %c0 = arith.constant 0 : index
    %c0_0 = arith.constant 0 : index
    %0 = vector.load %arg1[%c0, %c0_0] : memref<128x32xbf16, #tpu.memory_space<vmem>>, vector<128x32xbf16>
    %c0_1 = arith.constant 0 : index
    %c0_2 = arith.constant 0 : index
    %1 = vector.load %arg2[%c0_1, %c0_2] : memref<32x128xbf16, #tpu.memory_space<vmem>>, vector<32x128xbf16>
    %cst = arith.constant dense<0.000000e+00> : vector<128x128xf32>
    %2 = tpu.matmul %0, %1, %cst {dimension_numbers = #tpu.dot_dimension_numbers<[1], [0], [0], [1], [0, 0, 1, 1], [], []>} : vector<128x32xbf16>, vector<32x128xbf16>, vector<128x128xf32> -> vector<128x128xf32>
    %c0_3 = arith.constant 0 : index
    %c0_4 = arith.constant 0 : index
    %3 = vector.load %arg3[%c0_3, %c0_4] : memref<1x128xf32, #tpu.memory_space<vmem>>, vector<1x128xf32>
    %4 = vector.broadcast %3 : vector<1x128xf32> to vector<128x128xf32>
    %5 = arith.addf %2, %4 : vector<128x128xf32>
    %cst_5 = arith.constant 0.000000e+00 : f32
    %6 = vector.broadcast %cst_5 : f32 to vector<128x128xf32>
    %7 = arith.maximumf %5, %6 : vector<128x128xf32>
    %8 = arith.truncf %7 : vector<128x128xf32> to vector<128x128xbf16>
    %c0_6 = arith.constant 0 : index
    %c0_7 = arith.constant 0 : index
    %9 = vector.load %arg4[%c0_6, %c0_7] : memref<128x128xbf16, #tpu.memory_space<vmem>>, vector<128x128xbf16>
    tpu.vector_store %arg4[%c0_6, %c0_7], %8 {strides = array<i32>} : memref<128x128xbf16, #tpu.memory_space<vmem>>, vector<128x128xbf16>,
    return
  }
  func.func @transform_0(%arg0: i32) -> (i32, i32) {
    %c0_i32 = arith.constant 0 : i32
    %c0_i32_0 = arith.constant 0 : i32
    return %arg0, %c0_i32 : i32, i32
  }
  func.func @transform_1(%arg0: i32) -> (i32, i32) {
    %c0_i32 = arith.constant 0 : i32
    %c0_i32_0 = arith.constant 0 : i32
    %c0_i32_1 = arith.constant 0 : i32
    return %c0_i32, %c0_i32_0 : i32, i32
  }
  func.func @transform_2(%arg0: i32) -> (i32, i32) {
    %c0_i32 = arith.constant 0 : i32
    %c0_i32_0 = arith.constant 0 : i32
    %c0_i32_1 = arith.constant 0 : i32
    return %c0_i32, %c0_i32_0 : i32, i32
  }
  func.func @transform_3(%arg0: i32) -> (i32, i32) {
    %c0_i32 = arith.constant 0 : i32
    %c0_i32_0 = arith.constant 0 : i32
    return %arg0, %c0_i32 : i32, i32
  }
}

module attributes {stable_mosaic.version = 11 : i64} {
  func.func @conv_relu_pool_kernel(%arg0: i32, %arg1: i32, %arg2: memref<1x16x144xbf16, #tpu.memory_space<vmem>>, %arg3: memref<144x128xbf16, #tpu.memory_space<vmem>>, %arg4: memref<1x128xf32, #tpu.memory_space<vmem>>, %arg5: memref<1x1x128xf32, #tpu.memory_space<vmem>>) attributes {dimension_semantics = [#tpu.dimension_semantics<parallel>, #tpu.dimension_semantics<arbitrary>], iteration_bounds = array<i64: 2, 1>, scalar_prefetch = 0 : i64, scratch_operands = 0 : i64, tpu.core_type = #tpu.core_type<tc>, window_params = [{transform_indices = @transform_0, window_bounds = array<i64: 1, 16, 144>}, {pipeline_mode = #tpu.pipeline_mode<synchronous>, transform_indices = @transform_1, window_bounds = array<i64: 144, 128>}, {pipeline_mode = #tpu.pipeline_mode<synchronous>, transform_indices = @transform_2, window_bounds = array<i64: 1, 128>}, {transform_indices = @transform_3, window_bounds = array<i64: 1, 1, 128>}]} {
    %c0 = arith.constant 0 : index
    %c0_0 = arith.constant 0 : index
    %c0_1 = arith.constant 0 : index
    %0 = vector.load %arg2[%c0, %c0_0, %c0_1] : memref<1x16x144xbf16, #tpu.memory_space<vmem>>, vector<1x16x144xbf16>
    %1 = vector.shape_cast %0 : vector<1x16x144xbf16> to vector<16x144xbf16>
    %c0_2 = arith.constant 0 : index
    %c0_3 = arith.constant 0 : index
    %2 = vector.load %arg3[%c0_2, %c0_3] : memref<144x128xbf16, #tpu.memory_space<vmem>>, vector<144x128xbf16>
    %cst = arith.constant dense<0.000000e+00> : vector<16x128xf32>
    %3 = tpu.matmul %1, %2, %cst {dimension_numbers = #tpu.dot_dimension_numbers<[1], [0], [0], [1], [0, 0, 1, 1], [], []>} : vector<16x144xbf16>, vector<144x128xbf16>, vector<16x128xf32> -> vector<16x128xf32>
    %c0_4 = arith.constant 0 : index
    %c0_5 = arith.constant 0 : index
    %4 = vector.load %arg4[%c0_4, %c0_5] : memref<1x128xf32, #tpu.memory_space<vmem>>, vector<1x128xf32>
    %5 = vector.broadcast %4 : vector<1x128xf32> to vector<16x128xf32>
    %6 = arith.addf %3, %5 : vector<16x128xf32>
    %cst_6 = arith.constant 0.000000e+00 : f32
    %7 = vector.broadcast %cst_6 : f32 to vector<16x128xf32>
    %8 = arith.maximumf %6, %7 : vector<16x128xf32>
    %9 = tpu.iota {dimensions = array<i32: 0>} : vector<16x128xi32>
    %c16_i32 = arith.constant 16 : i32
    %10 = arith.muli %arg1, %c16_i32 : i32
    %11 = vector.broadcast %10 : i32 to vector<16x128xi32>
    %12 = arith.addi %9, %11 : vector<16x128xi32>
    %c16_i32_7 = arith.constant 16 : i32
    %13 = vector.broadcast %c16_i32_7 : i32 to vector<16x128xi32>
    %14 = arith.cmpi slt, %12, %13 : vector<16x128xi32>
    %cst_8 = arith.constant 0.000000e+00 : f32
    %15 = vector.broadcast %cst_8 : f32 to vector<16x128xf32>
    %16 = arith.select %14, %8, %15 : vector<16x128xi1>, vector<16x128xf32>
    %cst_9 = arith.constant dense<0.000000e+00> : vector<128xf32>
    %17 = vector.multi_reduction <add>, %16, %cst_9 [0] : vector<16x128xf32> to vector<128xf32>
    %18 = vector.shape_cast %17 : vector<128xf32> to vector<1x128xf32>
    %c0_i32 = arith.constant 0 : i32
    %19 = arith.cmpi eq, %arg1, %c0_i32 : i32
    %20 = arith.extui %19 : i1 to i32
    %c0_i32_10 = arith.constant 0 : i32
    %21 = arith.cmpi ne, %20, %c0_i32_10 : i32
    scf.if %21 {
      %cst_19 = arith.constant 0.000000e+00 : f32
      %31 = vector.broadcast %cst_19 : f32 to vector<1x128xf32>
      %c0_20 = arith.constant 0 : index
      %c0_21 = arith.constant 0 : index
      %c0_22 = arith.constant 0 : index
      %32 = vector.load %arg5[%c0_20, %c0_21, %c0_22] : memref<1x1x128xf32, #tpu.memory_space<vmem>>, vector<1x1x128xf32>
      %33 = vector.shape_cast %32 : vector<1x1x128xf32> to vector<1x128xf32>
      %34 = vector.shape_cast %31 : vector<1x128xf32> to vector<1x1x128xf32>
      tpu.vector_store %arg5[%c0_20, %c0_21, %c0_22], %34 {strides = array<i32>} : memref<1x1x128xf32, #tpu.memory_space<vmem>>, vector<1x1x128xf32>,
    } else {
    }
    %c0_11 = arith.constant 0 : index
    %c0_12 = arith.constant 0 : index
    %c0_13 = arith.constant 0 : index
    %22 = vector.load %arg5[%c0_11, %c0_12, %c0_13] : memref<1x1x128xf32, #tpu.memory_space<vmem>>, vector<1x1x128xf32>
    %23 = vector.shape_cast %22 : vector<1x1x128xf32> to vector<1x128xf32>
    %24 = arith.addf %23, %18 : vector<1x128xf32>
    %c0_14 = arith.constant 0 : index
    %c0_15 = arith.constant 0 : index
    %c0_16 = arith.constant 0 : index
    %25 = vector.load %arg5[%c0_14, %c0_15, %c0_16] : memref<1x1x128xf32, #tpu.memory_space<vmem>>, vector<1x1x128xf32>
    %26 = vector.shape_cast %25 : vector<1x1x128xf32> to vector<1x128xf32>
    %27 = vector.shape_cast %24 : vector<1x128xf32> to vector<1x1x128xf32>
    tpu.vector_store %arg5[%c0_14, %c0_15, %c0_16], %27 {strides = array<i32>} : memref<1x1x128xf32, #tpu.memory_space<vmem>>, vector<1x1x128xf32>,
    %c0_i32_17 = arith.constant 0 : i32
    %28 = arith.cmpi eq, %arg1, %c0_i32_17 : i32
    %29 = arith.extui %28 : i1 to i32
    %c0_i32_18 = arith.constant 0 : i32
    %30 = arith.cmpi ne, %29, %c0_i32_18 : i32
    scf.if %30 {
      %c0_19 = arith.constant 0 : index
      %c0_20 = arith.constant 0 : index
      %c0_21 = arith.constant 0 : index
      %31 = vector.load %arg5[%c0_19, %c0_20, %c0_21] : memref<1x1x128xf32, #tpu.memory_space<vmem>>, vector<1x1x128xf32>
      %32 = vector.shape_cast %31 : vector<1x1x128xf32> to vector<1x128xf32>
      %cst_22 = arith.constant 6.250000e-02 : f32
      %33 = vector.broadcast %cst_22 : f32 to vector<1x128xf32>
      %34 = arith.mulf %32, %33 : vector<1x128xf32>
      %c0_23 = arith.constant 0 : index
      %c0_24 = arith.constant 0 : index
      %c0_25 = arith.constant 0 : index
      %35 = vector.load %arg5[%c0_23, %c0_24, %c0_25] : memref<1x1x128xf32, #tpu.memory_space<vmem>>, vector<1x1x128xf32>
      %36 = vector.shape_cast %35 : vector<1x1x128xf32> to vector<1x128xf32>
      %37 = vector.shape_cast %34 : vector<1x128xf32> to vector<1x1x128xf32>
      tpu.vector_store %arg5[%c0_23, %c0_24, %c0_25], %37 {strides = array<i32>} : memref<1x1x128xf32, #tpu.memory_space<vmem>>, vector<1x1x128xf32>,
    } else {
    }
    return
  }
  func.func @transform_0(%arg0: i32, %arg1: i32) -> (i32, i32, i32) {
    %c0_i32 = arith.constant 0 : i32
    %c0_i32_0 = arith.constant 0 : i32
    return %arg0, %arg1, %c0_i32 : i32, i32, i32
  }
  func.func @transform_1(%arg0: i32, %arg1: i32) -> (i32, i32) {
    %c0_i32 = arith.constant 0 : i32
    %c0_i32_0 = arith.constant 0 : i32
    %c0_i32_1 = arith.constant 0 : i32
    return %c0_i32, %c0_i32_0 : i32, i32
  }
  func.func @transform_2(%arg0: i32, %arg1: i32) -> (i32, i32) {
    %c0_i32 = arith.constant 0 : i32
    %c0_i32_0 = arith.constant 0 : i32
    %c0_i32_1 = arith.constant 0 : i32
    return %c0_i32, %c0_i32_0 : i32, i32
  }
  func.func @transform_3(%arg0: i32, %arg1: i32) -> (i32, i32, i32) {
    %c0_i32 = arith.constant 0 : i32
    %c0_i32_0 = arith.constant 0 : i32
    %c0_i32_1 = arith.constant 0 : i32
    return %arg0, %c0_i32, %c0_i32_0 : i32, i32, i32
  }
}

</mosaic_0001>

<bundles_post_ra>
// kernel: _extract_impl.2
= control target key start
LH: loop header
LB: loop body
LE: loop exit
PB: predicated region body
PF: predicated region fallthrough
CT: control target
= control target key end

     0   :  { %vm91_vm0 = vcmask 261120   ;;  %s414_s1 = inlined_call_operand.vmem [shape: bf16[32,128], index: 1, kind: input, shape index: {}]   ;;  %s415_s0 = inlined_call_operand.vmem [shape: bf16[128,32], index: 0, kind: input, shape index: {}]   ;;  %s416_s2 = inlined_call_operand.vmem [shape: f32[1,128], index: 2, kind: input, shape index: {}]   ;;  %s417_s3 = inlined_call_operand.vmem [shape: bf16[128,128], index: 3, kind: output, shape index: {}]  }
   0x1   :  { %v274_v0 = vld [vmem:[%s414_s1 + $0x8] sm:$0xff]  ;;  %v273_v1 = vld [vmem:[%s414_s1] sm:$0xff]  ;;  %v267_v3 = vld [vmem:[%s415_s0 + $0x10] sm:$0xff] }
   0x2   :  { %122 = vmatpush.bf16.msra.mxu0 %v274_v0  ;;  %322 = vmatpush.bf16.msra.mxu1 %v274_v0  ;;  %v265_v2 = vld [vmem:[%s415_s0] sm:$0xff]  ;;  %v271_v5 = vld [vmem:[%s415_s0 + $0x30] sm:$0xff]  ;;  %v266_v6 = vld [vmem:[%s415_s0 + $0x8] sm:$0xff] }
   0x3   :  { %323 = vmatpush.bf16.msra.mxu2 %v274_v0  ;;  %324 = vmatpush.bf16.msra.mxu3 %v274_v0  ;;  %v269_v4 = vld [vmem:[%s415_s0 + $0x20] sm:$0xff]  ;;  %v268_v7 = vld [vmem:[%s415_s0 + $0x18] sm:$0xff]  ;;  %v270_v8 = vld [vmem:[%s415_s0 + $0x28] sm:$0xff] }
   0x4   :  { %v272_v9 = vld [vmem:[%s415_s0 + $0x38] sm:$0xff]  ;;  %v328_v12 = vld [vmem:[%s416_s2] ss:$0 sm:$0xff] }
   0x6   :  { %123 = vmatpush.bf16.msra.mxu0 %v273_v1  ;;  %325 = vmatpush.bf16.msra.mxu1 %v273_v1 }
   0x7   :  { %326 = vmatpush.bf16.msra.mxu2 %v273_v1  ;;  %327 = vmatpush.bf16.msra.mxu3 %v273_v1 }
   0x9   :  { %257 = vmatmul.msk.bf16.vlgmr.msra.gmra.mxu0 %vm91_vm0, %v265_v2  ;;  %259 = vmatmul.msk.bf16.vlgmr.msra.gmra.mxu1 %vm91_vm0, %v267_v3 }
   0xa   :  { %261 = vmatmul.msk.bf16.vlgmr.msra.gmra.mxu2 %vm91_vm0, %v269_v4  ;;  %263 = vmatmul.msk.bf16.vlgmr.msra.gmra.mxu3 %vm91_vm0, %v271_v5 }
  0x19   :  { %258 = vmatmul.msk.bf16.gmra.mxu0 %vm91_vm0, %v266_v6  ;;  %260 = vmatmul.msk.bf16.gmra.mxu1 %vm91_vm0, %v268_v7 }
  0x1a   :  { %262 = vmatmul.msk.bf16.gmra.mxu2 %vm91_vm0, %v270_v8  ;;  %264 = vmatmul.msk.bf16.gmra.mxu3 %vm91_vm0, %v272_v9 }
  0x86   :  { %v125_v10 = vpop.f32.mrf.mxu0  ;;  %v135_v11 = vpop.f32.mrf.mxu1 }
  0x87   :  { %v126_v13 = vadd.f32 %v328_v12, %v125_v10  ;;  %v136_v14 = vadd.f32 %v328_v12, %v135_v11 }
  0x89   :  { %v165_v21 = vmax.f32 %v126_v13, 0.0  ;;  %v169_v22 = vmax.f32 %v136_v14, 0.0 }
  0x8d   :  { %v145_v15 = vpop.f32.mrf.mxu2  ;;  %v155_v16 = vpop.f32.mrf.mxu3 }
  0x8e   :  { %v127_v17 = vpop.f32.mrf.mxu0  ;;  %v137_v18 = vpop.f32.mrf.mxu1  ;;  %v146_v27 = vadd.f32 %v328_v12, %v145_v15  ;;  %v156_v28 = vadd.f32 %v328_v12, %v155_v16 }
  0x8f   :  { %v128_v19 = vadd.f32 %v328_v12, %v127_v17  ;;  %v138_v20 = vadd.f32 %v328_v12, %v137_v18 }
  0x90   :  { %v173_v35 = vmax.f32 %v146_v27, 0.0  ;;  %v177_v36 = vmax.f32 %v156_v28, 0.0 }
  0x91   :  { %v166_v23 = vmax.f32 %v128_v19, 0.0  ;;  %v170_v24 = vmax.f32 %v138_v20, 0.0 }
  0x93   :  { %v278_v25 = vpack.c.bf16 %v166_v23, %v165_v21  ;;  %v288_v26 = vpack.c.bf16 %v170_v24, %v169_v22 }
  0x95   :  { %279 = vst [vmem:[%s417_s3] sm:$0xff] %v278_v25   ;;  %v147_v29 = vpop.f32.mrf.mxu2  ;;  %v157_v30 = vpop.f32.mrf.mxu3 }
  0x96   :  { %316 = vst [vmem:[%s417_s3 + $0x10] sm:$0xff] %v288_v26   ;;  %v148_v31 = vadd.f32 %v328_v12, %v147_v29  ;;  %v158_v32 = vadd.f32 %v328_v12, %v157_v30  ;;  %v130_v33 = vpop.f32.mrf.mxu0  ;;  %v140_v34 = vpop.f32.mrf.mxu1 }
  0x97   :  { %v131_v41 = vadd.f32 %v328_v12, %v130_v33  ;;  %v141_v42 = vadd.f32 %v328_v12, %v140_v34 }
  0x98   :  { %v174_v37 = vmax.f32 %v148_v31, 0.0  ;;  %v178_v38 = vmax.f32 %v158_v32, 0.0 }
  0x99   :  { %v167_v49 = vmax.f32 %v131_v41, 0.0  ;;  %v171_v50 = vmax.f32 %v141_v42, 0.0 }
  0x9a   :  { %v298_v39 = vpack.c.bf16 %v174_v37, %v173_v35  ;;  %v308_v40 = vpack.c.bf16 %v178_v38, %v177_v36 }
  0x9c   :  { %318 = vst [vmem:[%s417_s3 + $0x20] sm:$0xff] %v298_v39  }
  0x9d   :  { %320 = vst [vmem:[%s417_s3 + $0x30] sm:$0xff] %v308_v40   ;;  %v150_v43 = vpop.f32.mrf.mxu2  ;;  %v160_v44 = vpop.f32.mrf.mxu3 }
  0x9e   :  { %v132_v45 = vpop.f32.mrf.mxu0  ;;  %v142_v46 = vpop.f32.mrf.mxu1  ;;  %v151_v55 = vadd.f32 %v328_v12, %v150_v43  ;;  %v161_v56 = vadd.f32 %v328_v12, %v160_v44 }
  0x9f   :  { %v133_v47 = vadd.f32 %v328_v12, %v132_v45  ;;  %v143_v48 = vadd.f32 %v328_v12, %v142_v46 }
  0xa0   :  { %v175_v61 = vmax.f32 %v151_v55, 0.0  ;;  %v179_v62 = vmax.f32 %v161_v56, 0.0 }
  0xa1   :  { %v168_v51 = vmax.f32 %v133_v47, 0.0  ;;  %v172_v52 = vmax.f32 %v143_v48, 0.0 }
  0xa3   :  { %v283_v53 = vpack.c.bf16 %v168_v51, %v167_v49  ;;  %v293_v54 = vpack.c.bf16 %v172_v52, %v171_v50 }
  0xa5   :  { %315 = vst [vmem:[%s417_s3 + $0x8] sm:$0xff] %v283_v53   ;;  %v152_v57 = vpop.f32.mrf.mxu2  ;;  %v162_v58 = vpop.f32.mrf.mxu3 }
  0xa6   :  { %317 = vst [vmem:[%s417_s3 + $0x18] sm:$0xff] %v293_v54   ;;  %v153_v59 = vadd.f32 %v328_v12, %v152_v57  ;;  %v163_v60 = vadd.f32 %v328_v12, %v162_v58 }
  0xa8   :  { %v176_v63 = vmax.f32 %v153_v59, 0.0  ;;  %v180_v0 = vmax.f32 %v163_v60, 0.0 }
  0xaa   :  { %v303_v1 = vpack.c.bf16 %v176_v63, %v175_v61  ;;  %v313_v2 = vpack.c.bf16 %v180_v0, %v179_v62 }
  0xac   :  { %319 = vst [vmem:[%s417_s3 + $0x28] sm:$0xff] %v303_v1  }
  0xad   :  { %321 = vst [vmem:[%s417_s3 + $0x38] sm:$0xff] %v313_v2  }

// kernel: _extract_impl.3
= control target key start
LH: loop header
LB: loop body
LE: loop exit
PB: predicated region body
PF: predicated region fallthrough
CT: control target
= control target key end

     0   :  { %8 = vsyncpa [#allocation3], 0  ;;  %s801_s0 = inlined_call_operand.vmem [shape: bf16[2,16,144], index: 0, kind: input, shape index: {}]   ;;  %s802_s1 = inlined_call_operand.vmem [shape: bf16[144,128], index: 1, kind: input, shape index: {}]   ;;  %s803_s2 = inlined_call_operand.vmem [shape: f32[1,128], index: 2, kind: input, shape index: {}]   ;;  %s804_s3 = inlined_call_operand.hbm [shape: f32[2,1,128], index: 3, kind: output, shape index: {}]  }
   0x1   :  { %10 = vsyncpa [#allocation3 + $0x1], 0  ;;  %s662_s12 = smov 0   ;;  %s664_s13 = smov 0  }
   0x2   :  { %s666_s14 = smov 0   ;;  %s668_s15 = smov 0  }
   0x3   :  { %s670_s16 = smov 0   ;;  %s672_s17 = smov 0  }
   0x4 LB: > { %s438_s18 = sadd.s32 4294967295, %s639_s17   ;;  %s439_s19 = sadd.s32 4294967294, %s639_s17   ;;  %s639_s17 = sphi %s672_s17, %s16_s17   ;;  %s635_s16 = sphi %s670_s16, %s811_s16   ;;  %s631_s15 = sphi %s668_s15, %s810_s15   ;;  %s627_s14 = sphi %s666_s14, %s809_s14   ;;  %s623_s13 = sphi %s664_s13, %s808_s13   ;;  %s619_s12 = sphi %s662_s12, %s807_s12  }
   0x5   : > { %s28_s20 = sadd.s32 1, %s635_s16  ;;  %s105_s21 = sadd.s32 1, %s627_s14 }
   0x6   : > { %p30_p0 = scmp.ge.s32.totalorder %s28_s20, 2  ;;  %p115_p1 = scmp.ne.s32.totalorder %s627_s14, %s623_s13 }
   0x7   : > { %p116_p2 = scmp.eq.s32.totalorder %s438_s18, 1  ;;  %p121_p3 = scmp.ne.s32.totalorder %s623_s13, %s619_s12 }
   0x8   : > { %s813_s20 = smov (%p30_p0, %s28_s20), 0  ;;  %p122_p5 = scmp.eq.s32.totalorder %s439_s19, 1 }
   0x9   : > { %p702_p4 = por %p116_p2, %p115_p1  ;;  %s102_s23 = ssub.s32 %s635_s16, %s813_s20 }
   0xa   : > { %p442_p6 = scmp.ge.s32.totalorder %s639_s17, 1  ;;  %p103_p7 = scmp.eq.s32.totalorder %s102_s23, 0 }
   0xb   : > { %p709_p8 = por %p122_p5, %p121_p3  ;;  %p160_p9 = scmp.lt.s32.totalorder %s639_s17, 3 }
   0xc   : > { %s715_s25 = scalar_select %p103_p7, %s627_s14, %s105_s21  }
   0xd   : > { %p161_p10 = pnand %p442_p6, %p160_p9 }
   0xe   : > { %p189_p11 = scmp.lt.s32.totalorder (!%p161_p10), %s631_s15, 1  ;;  %s362_s11 = scalar_lea.hbm (!%p161_p10), %s804_s3, %s631_s15 }
   0xf   : > { %164 = sbr.rel (%p161_p10) target bundleno = 221 (0xdd), region = 32  ;;  %s366_s19 = sshll.u32 (!%p161_p10), %s362_s11, 4  ;;  %s367_s19 = int_to_ptr.hbm [resolvable:$true] %s366_s19 }
  0x10   : > { %s575_s23 = sshra.s32 (!%p161_p10), %s367_s19, 4  ;;  %s576_s23 = int_to_ptr.hbm [resolvable:$true] %s575_s23 }
  0x11   : > { %s577_s26 = scalar_lea.hbm (!%p161_p10), %s576_s23, 1  ;;  %p582_p1 = scmp.lt.s32.totalorder (!%p161_p10), %s576_s23, %s804_s3 }
  0x12   : > { %p578_p12 = scmp.ne.s32.totalorder (!%p161_p10), %s576_s23, %s577_s26 }
  0x14   : > { %v502_v0 = vld [vmem:[%s802_s1 + $0x38] sm:$0xff]  ;;  %v501_v1 = vld [vmem:[%s802_s1 + $0x30] sm:$0xff]  ;;  %v503_v2 = vld [vmem:[%s802_s1 + $0x40] sm:$0xff]  ;;  %s190_s5 = scalar_select %p189_p11, %s631_s15, 1  ;;  %vm287_vm0 = vcmask 130048   ;;  %v641_v15 = vmov 0.0  }
  0x15   : > { %291 = vmatpush.bf16.msra.mxu0 %v502_v0  ;;  %312 = vmatpush.bf16.msra.mxu1 %v503_v2  ;;  %v500_v3 = vld [vmem:[%s802_s1 + $0x28] sm:$0xff]  ;;  %v499_v7 = vld [vmem:[%s802_s1 + $0x20] sm:$0xff]  ;;  %v498_v8 = vld [vmem:[%s802_s1 + $0x18] sm:$0xff]  ;;  %p579_p13 = pnand %p578_p12, %p702_p4  ;;  %s581_s15 = scalar_lea.hbm %s804_s3, 2 }
  0x16   : > { %s492_s6 = sshll.u32 %s190_s5, 4  ;;  %v497_v9 = vld [vmem:[%s802_s1 + $0x10] sm:$0xff]  ;;  %v496_v10 = vld [vmem:[%s802_s1 + $0x8] sm:$0xff]  ;;  %v495_v11 = vld [vmem:[%s802_s1] sm:$0xff]  ;;  %s186_s5 = sand.u32 1, %s623_s13  }
  0x17   : > { %s197_s9 = scalar_lea.vmem %s801_s0, %s492_s6  ;;  %s752_s6 = scalar_lea.vmem [#allocation2], %s186_s5  ;;  %v560_v18 = vld [vmem:[%s803_s2] ss:$0 sm:$0xff] }
  0x18   : > { %v493_v4 = vld [vmem:[%s197_s9 + $0x4] sm:$0xf]  ;;  %v449_v5 = vld [vmem:[%s197_s9 + $0x8] sm:$0xf0]  ;;  %v447_v12 = vld [vmem:[%s197_s9] sm:$0xf]  ;;  %p580_p0 = pneg %p579_p13  ;;  %p583_p2 = scmp.lt.s32.totalorder %s581_s15, %s577_s26 }
  0x19   : > { %292 = vmatpush.bf16.msra.mxu0 %v501_v1  ;;  %v452_v6 = vor.u32 %v493_v4, %v449_v5  ;;  %v494_v13 = vld [vmem:[%s197_s9 + $0x4] sm:$0xf0]  ;;  %343 = vst [vmem:[%s752_s6] sm:$0x1] %v641_v15  ;;  %s364_s18 = sshll.u32 %s752_s6, 4  ;;  %s354_s21 = scalar_lea.sflag [#allocation3], %s186_s5  ;;  %s365_s18 = int_to_ptr.vmem [resolvable:$true] %s364_s18 }
  0x1a   : > { %v448_v14 = vor.u32 %v494_v13, %v447_v12  ;;  %p584_p3 = por %p583_p2, %p582_p1 }
  0x1b   : > { %489 = vmatmul.msk.bf16.vlgmr.msra.gmra.mxu1 %vm287_vm0, %v452_v6 }
  0x1c   : > { %p585_p5 = pnand %p584_p3, %p580_p0 }
  0x1d   : > { %293 = vmatpush.bf16.msra.mxu0 %v500_v3 }
  0x20   : > { %v344_v33 = vld [vmem:[%s752_s6] sm:$0x1] }
  0x21   : > { %294 = vmatpush.bf16.msra.mxu0 %v499_v7 }
  0x25   : > { %295 = vmatpush.bf16.msra.mxu0 %v498_v8 }
  0x29   : > { %296 = vmatpush.bf16.msra.mxu0 %v497_v9 }
  0x2d   : > { %297 = vmatpush.bf16.msra.mxu0 %v496_v10 }
  0x31   : > { %298 = vmatpush.bf16.msra.mxu0 %v495_v11 }
  0x34   : > { %299 = vmatmul.bf16.vlgmr.msra.gmra.mxu0 %v448_v14 }
  0x98   : > { %v314_v16 = vpop.f32.mrf.mxu1 }
  0xa0   : > { %v316_v23 = vpop.f32.mrf.mxu1 }
  0xb1   : > { %v300_v17 = vpop.f32.mrf.mxu0 }
  0xb2   : > { %v301_v19 = vadd.f32 %v560_v18, %v300_v17 }
  0xb4   : > { %v315_v21 = vadd.f32 %v314_v16, %v301_v19 }
  0xb6   : > { %v319_v25 = vmax.f32 %v315_v21, 0.0 }
  0xb9   : > { %v302_v20 = vpop.f32.mrf.mxu0 }
  0xba   : > { %v303_v22 = vadd.f32 %v560_v18, %v302_v20 }
  0xbc   : > { %v317_v24 = vadd.f32 %v316_v23, %v303_v22 }
  0xbe   : > { %v320_v26 = vmax.f32 %v317_v24, 0.0 }
  0xc0   : > { %v332_v27 = vadd.f32 %v320_v26, %v319_v25 }
  0xc2   : > { %v333_v28 = vrot.slane %v332_v27, 4 }
  0xc4   : > { %v334_v29 = vadd.f32 %v333_v28, %v332_v27 }
  0xc6   : > { %v335_v30 = vrot.slane %v334_v29, 2 }
  0xc8   : > { %v336_v31 = vadd.f32 %v335_v30, %v334_v29 }
  0xca   : > { %v337_v32 = vrot.slane %v336_v31, 1 }
  0xcc   : > { %v338_v34 = vadd.f32 %v337_v32, %v336_v31 }
  0xce   : > { %v345_v35 = vadd.f32 %v344_v33, %v338_v34 }
  0xd0   : > { %346 = vst [vmem:[%s752_s6] sm:$0x1] %v345_v35 }
  0xd7   : > { %v350_v36 = vld [vmem:[%s752_s6] sm:$0x1] }
  0xd8   : > { %v351_v37 = vmul.f32 0.0625, %v350_v36 }
  0xda   : > { %352 = vst [vmem:[%s752_s6] sm:$0x1] %v351_v37 }
  0xdb   : > { %588 = shalt.err (!%p585_p5)
}
  0xdc   : > { %504 = dma.vmem_to_hbm [thread:$0]  (%p702_p4), %s365_s18, 16, %s367_s19, %s354_s21  }
  0xdd PF: > { %p510_p6 = scmp.ge.s32.totalorder %s639_s17, 2  ;;  %s378_s4 = sand.u32 1, %s619_s12  }
  0xde   : > { %s379_s5 = scalar_lea.sflag [#allocation3], %s378_s4 }
  0xdf   : > { %p507_p7 = pnand %p510_p6, %p709_p8 }
  0xe1   : > { %p508_p9 = pneg %p507_p7 }
  0xe3   : > { %614 = dma.done.wait (%p508_p9), %s379_s5, 16  }
  0xe4   : > { %616 = vsyncadd (%p508_p9), %s379_s5, 4294967280  ;;  %s16_s17 = sadd.s32 1, %s639_s17   ;;  %s807_s12 = smov %s623_s13 }
  0xe5   : > { %p13_p10 = scmp.ge.s32.totalorder %s16_s17, 4   ;;  %s808_s13 = smov %s627_s14 }
  0xe6   : > { %s809_s14 = smov %s715_s25  ;;  %s810_s15 = smov %s635_s16 }
  0xe7   : > { %s811_s16 = smov %s813_s20  ;;  %15 = sbr.rel (!%p13_p10) target bundleno = 4 (0x4), region = 75 }
  0xec   :  { %384 = vsyncpa [#allocation3], 1 }
  0xed   :  { %386 = vsyncpa [#allocation3 + $0x1], 1 }

</bundles_post_ra>
